<compile_context>
chip_gen: v7x
topology: tpu7x:2x2x1
jax: 0.10.0
libtpu: 0.0.40
codegen_flags: <defaults>
</compile_context>

<pallas_src>
import functools

import jax
import jax.numpy as jnp
from jax.experimental import pallas as pl
from jax.experimental.pallas import tpu as pltpu


_VMEM_SOFT_CAP = 40 * 1024 * 1024    # keep the tile working set under this (v7x has 64 MiB/TC)
_VMEM_DECL_CAP = 112 * 1024 * 1024   # never declare above this (v5e/v6e have 128 MiB)


def _round_up(a, m):
    return -(-a // m) * m


def _cdiv(a, b):
    return -(-a // b)


def _vmem_budget(tm, Kp, Ep):
    """Estimated VMEM working set, incl. compiler-materialized f32 LN temps."""
    return (2 * tm * Kp * 2        # x tiles (bf16, double-buffered)
            + 2 * tm * Ep * 2      # out tiles (bf16, double-buffered)
            + Kp * Ep * 2          # weight (bf16, single-buffered)
            + 2 * 3 * Ep * 4       # stacked params (tiny)
            + 3 * tm * Ep * 4)     # f32 LN temporaries (y, y*y, yn)


def _const_spec(shape):
    """Constant-index block; single-buffered when pipeline_mode is supported."""
    index_map = lambda i: (0, 0)
    try:
        return pl.BlockSpec(shape, index_map, pipeline_mode=pl.Buffered(1))
    except Exception:  # older BlockSpec without pipeline_mode
        return pl.BlockSpec(shape, index_map)


def _patch_embed_kernel(x_ref, w_ref, p_ref, o_ref, *, e_true, eps, add_bias):
    # x_ref: (tm, Kp) bf16; w_ref: (Kp, Ep) bf16; p_ref: (3, Ep) f32 =
    # [bias; gamma; beta]; o_ref: (tm, Ep) bf16.
    # Padded K/E entries of x/w/params are zero, so the math below is exact.
    y = jnp.dot(x_ref[...], w_ref[...], preferred_element_type=jnp.float32)
    if add_bias:  # only when the bias could not be folded into the GEMM
        y = y + p_ref[0:1, :]

    # LayerNorm over the true E columns. Padded columns of y are exactly zero,
    # so plain sums over the padded lane dim are already the true sums.
    # One-pass moments (E[y^2] - mean^2), clamped at zero.
    # TODO(synk): switch to two-pass variance if |bias| >> feature std ever
    # makes the one-pass f32 form lose too much precision.
    inv_e = 1.0 / e_true
    mean = jnp.sum(y, axis=-1, keepdims=True) * inv_e
    msq = jnp.sum(y * y, axis=-1, keepdims=True) * inv_e
    var = jnp.maximum(msq - mean * mean, 0.0)
    r = jax.lax.rsqrt(var + eps)          # (tm, 1)
    c = -mean * r                          # (tm, 1)
    yn = y * r + c                         # single f32 FMA pass

    # gamma/beta affine in bf16 (2x VPU rate on v6e/v7x) right before the store.
    # Padded gamma/beta columns are zero -> padded output columns are zero.
    g = p_ref[1:2, :].astype(jnp.bfloat16)
    b = p_ref[2:3, :].astype(jnp.bfloat16)
    o_ref[...] = (yn.astype(jnp.bfloat16) * g + b).astype(o_ref.dtype)


def patch_embed(x, w_conv, b_conv, gamma, beta, patch_size, eps=1e-5,
                out_dtype=jnp.bfloat16):
    """x: (B, C, H, W) f32; w_conv: (E, C, p, p); b_conv/gamma/beta: (E,).

    Returns (B, N, E) in `out_dtype` (default bf16, the model compute dtype).
    """
    B, C, H, W = x.shape
    E = w_conv.shape[0]
    p = patch_size
    Hp, Wp = H // p, W // p
    N = Hp * Wp
    K = C * p * p
    M = B * N

    Kp = _round_up(K, 128)
    Ep = _round_up(E, 128)
    fold_bias = Kp > K  # a spare zero-padded K column exists -> fold bias there

    # Row tile: multiple of 16 (bf16 sublane packing), capped at 512; ensure at
    # least 2 tiles when there is enough work (v7x: 2 TensorCores share the
    # "parallel" grid axis); shrink while the VMEM working set is too big.
    tm = min(512, _round_up(max(M, 1), 16))
    if M > 16 and _cdiv(M, tm) < 2:
        tm = max(16, _round_up(_cdiv(M, 2), 16))
    while tm > 16 and _vmem_budget(tm, Kp, Ep) > _VMEM_SOFT_CAP:
        tm = max(16, _round_up(tm // 2, 16))
    Mp = _round_up(M, tm)
    grid_m = Mp // tm

    # im2col: NCHW -> (M, K) with pixel order (C, ph, pw) matching the conv
    # weight; emitted directly in bf16 so this wrapper pass is half as wide.
    xp = x.reshape(B, C, Hp, p, Wp, p)
    xp = jnp.transpose(xp, (0, 2, 4, 1, 3, 5)).reshape(M, K).astype(jnp.bfloat16)
    if Mp != M or Kp != K:
        xp = jnp.pad(xp, ((0, Mp - M), (0, Kp - K)))

    # Conv weight (E, C, p, p) -> (Kp, Ep) bf16 for the MXU.
    w = w_conv.reshape(E, K).T.astype(jnp.bfloat16)
    if Kp != K or Ep != E:
        w = jnp.pad(w, ((0, Kp - K), (0, Ep - E)))
    if fold_bias:
        # x[:, K] = 1, w[K, :E] = bias  ->  the MXU adds the bias for free.
        xp = xp.at[:, K].set(1.0)
        w = w.at[K, :E].set(b_conv.astype(jnp.bfloat16))

    def _row(v):
        return jnp.pad(v.astype(jnp.float32), (0, Ep - E)).reshape(1, Ep)

    params = jnp.concatenate([_row(b_conv), _row(gamma), _row(beta)], axis=0)

    vmem_limit = int(max(32 * 1024 * 1024,
                         min(_VMEM_DECL_CAP, _vmem_budget(tm, Kp, Ep) * 1.3)))

    kernel = functools.partial(_patch_embed_kernel, e_true=float(E),
                               eps=float(eps), add_bias=not fold_bias)

    out = pl.pallas_call(
        kernel,
        out_shape=jax.ShapeDtypeStruct((Mp, Ep), jnp.bfloat16),
        grid_spec=pltpu.PrefetchScalarGridSpec(
            num_scalar_prefetch=0,
            grid=(grid_m,),
            in_specs=[
                pl.BlockSpec((tm, Kp), lambda i: (i, 0)),
                _const_spec((Kp, Ep)),
                _const_spec((3, Ep)),
            ],
            out_specs=pl.BlockSpec((tm, Ep), lambda i: (i, 0)),
        ),
        compiler_params=pltpu.CompilerParams(
            dimension_semantics=("parallel",),
            vmem_limit_bytes=vmem_limit,
        ),
    )(xp, w, params)

    # Strip M/E padding, reshape to (B, N, E); stays bf16 unless asked otherwise.
    out = out[:M, :E].reshape(B, N, E)
    return out if out_dtype == jnp.bfloat16 else out.astype(out_dtype)


if __name__ == "__main__":

    def reference_f32(x, w_conv, b_conv, gamma, beta, p, eps=1e-5):
        """Full-f32 PyTorch-equivalent reference (conv + LN)."""
        B, C, H, W = x.shape
        E = w_conv.shape[0]
        y = jax.lax.conv_general_dilated(
            x, w_conv, window_strides=(p, p), padding="VALID",
            dimension_numbers=("NCHW", "OIHW", "NCHW"))
        y = y + b_conv[None, :, None, None]
        y = y.reshape(B, E, -1).transpose(0, 2, 1)
        mu = y.mean(-1, keepdims=True)
        var = ((y - mu) ** 2).mean(-1, keepdims=True)
        return (y - mu) / jnp.sqrt(var + eps) * gamma + beta

    def reference_kernel_numerics(x, w_conv, b_conv, gamma, beta, p, eps=1e-5):
        """Emulates the kernel numerics: bf16 GEMM inputs, f32 LN, bf16 affine."""
        B, C, H, W = x.shape
        E = w_conv.shape[0]
        Hp, Wp = H // p, W // p
        K = C * p * p
        xp = x.reshape(B, C, Hp, p, Wp, p)
        xp = jnp.transpose(xp, (0, 2, 4, 1, 3, 5)).reshape(-1, K)
        xb = xp.astype(jnp.bfloat16).astype(jnp.float32)
        wb = w_conv.reshape(E, K).T.astype(jnp.bfloat16).astype(jnp.float32)
        bias = b_conv.astype(jnp.float32)
        if K % 128 != 0:  # kernel folds the bias through the MXU in bf16
            bias = bias.astype(jnp.bfloat16).astype(jnp.float32)
        y = xb @ wb + bias[None, :]
        mu = y.mean(-1, keepdims=True)
        var = ((y - mu) ** 2).mean(-1, keepdims=True)
        yn = (y - mu) * jax.lax.rsqrt(var + eps)
        out = (yn.astype(jnp.bfloat16) * gamma.astype(jnp.bfloat16)
               + beta.astype(jnp.bfloat16)).astype(jnp.float32)
        return out.reshape(B, Hp * Wp, E)

    def run_case(name, key, B, C, H, W, p, E):
        kx, kw, kb, kg, kbe = jax.random.split(key, 5)
        x = jax.random.normal(kx, (B, C, H, W), dtype=jnp.float32)
        w_conv = jax.random.normal(kw, (E, C, p, p), dtype=jnp.float32) * 0.02
        b_conv = jax.random.normal(kb, (E,), dtype=jnp.float32) * 0.02
        gamma = 1.0 + 0.1 * jax.random.normal(kg, (E,), dtype=jnp.float32)
        beta = 0.1 * jax.random.normal(kbe, (E,), dtype=jnp.float32)

        out = patch_embed(x, w_conv, b_conv, gamma, beta, p)
        out = jax.block_until_ready(out)
        N = (H // p) * (W // p)
        assert out.shape == (B, N, E), (name, out.shape)
        assert out.dtype == jnp.bfloat16, (name, out.dtype)
        o = out.astype(jnp.float32)

        tight = reference_kernel_numerics(x, w_conv, b_conv, gamma, beta, p)
        assert jnp.allclose(o, tight, atol=2e-2, rtol=2e-2), \
            f"{name}: bf16-GEMM reference mismatch"

        loose = reference_f32(x, w_conv, b_conv, gamma, beta, p)
        assert jnp.allclose(o, loose, atol=6e-2, rtol=6e-2), \
            f"{name}: f32 conv reference mismatch"

    root = jax.random.PRNGKey(0)
    k1, k2 = jax.random.split(root)

    # Case 1: K = 4*8*8 = 256 is 128-aligned -> in-kernel bias path, single tile.
    run_case("case1", k1, B=2, C=4, H=16, W=16, p=8, E=32)
    # Case 2: K = 3*8*8 = 192 not 128-aligned -> bias folded into the GEMM,
    # M = 32 -> two row tiles on the "parallel" axis, E = 48 exercises E padding.
    run_case("case2", k2, B=2, C=3, H=32, W=32, p=8, E=48)

    print("KERNEL_OK")
</pallas_src>

<mosaic_0001>
module attributes {stable_mosaic.version = 11 : i64} {
  func.func @_patch_embed_kernel(%arg0: i32, %arg1: memref<16x256xbf16, #tpu.memory_space<vmem>>, %arg2: memref<256x128xbf16, #tpu.memory_space<vmem>>, %arg3: memref<3x128xf32, #tpu.memory_space<vmem>>, %arg4: memref<16x128xbf16, #tpu.memory_space<vmem>>) attributes {dimension_semantics = [#tpu.dimension_semantics<parallel>], iteration_bounds = array<i64: 1>, scalar_prefetch = 0 : i64, scratch_operands = 0 : i64, tpu.core_type = #tpu.core_type<tc>, window_params = [{transform_indices = @transform_0, window_bounds = array<i64: 16, 256>}, {pipeline_mode = #tpu.pipeline_mode<synchronous>, transform_indices = @transform_1, window_bounds = array<i64: 256, 128>}, {pipeline_mode = #tpu.pipeline_mode<synchronous>, transform_indices = @transform_2, window_bounds = array<i64: 3, 128>}, {transform_indices = @transform_3, window_bounds = array<i64: 16, 128>}]} {
    %c0 = arith.constant 0 : index
    %c0_0 = arith.constant 0 : index
    %0 = vector.load %arg1[%c0, %c0_0] : memref<16x256xbf16, #tpu.memory_space<vmem>>, vector<16x256xbf16>
    %c0_1 = arith.constant 0 : index
    %c0_2 = arith.constant 0 : index
    %1 = vector.load %arg2[%c0_1, %c0_2] : memref<256x128xbf16, #tpu.memory_space<vmem>>, vector<256x128xbf16>
    %cst = arith.constant dense<0.000000e+00> : vector<16x128xf32>
    %2 = tpu.matmul %0, %1, %cst {dimension_numbers = #tpu.dot_dimension_numbers<[1], [0], [0], [1], [0, 0, 1, 1], [], []>} : vector<16x256xbf16>, vector<256x128xbf16>, vector<16x128xf32> -> vector<16x128xf32>
    %c0_3 = arith.constant 0 : index
    %c0_4 = arith.constant 0 : index
    %3 = vector.load %arg3[%c0_3, %c0_4] : memref<3x128xf32, #tpu.memory_space<vmem>>, vector<1x128xf32>
    %4 = vector.broadcast %3 : vector<1x128xf32> to vector<16x128xf32>
    %5 = arith.addf %2, %4 : vector<16x128xf32>
    %cst_5 = arith.constant dense<0.000000e+00> : vector<16xf32>
    %6 = vector.multi_reduction <add>, %5, %cst_5 [1] : vector<16x128xf32> to vector<16xf32>
    %7 = vector.shape_cast %6 : vector<16xf32> to vector<16x1xf32>
    %cst_6 = arith.constant 3.125000e-02 : f32
    %8 = vector.broadcast %cst_6 : f32 to vector<16x1xf32>
    %9 = arith.mulf %7, %8 : vector<16x1xf32>
    %10 = arith.mulf %5, %5 : vector<16x128xf32>
    %cst_7 = arith.constant dense<0.000000e+00> : vector<16xf32>
    %11 = vector.multi_reduction <add>, %10, %cst_7 [1] : vector<16x128xf32> to vector<16xf32>
    %12 = vector.shape_cast %11 : vector<16xf32> to vector<16x1xf32>
    %cst_8 = arith.constant 3.125000e-02 : f32
    %13 = vector.broadcast %cst_8 : f32 to vector<16x1xf32>
    %14 = arith.mulf %12, %13 : vector<16x1xf32>
    %15 = arith.mulf %9, %9 : vector<16x1xf32>
    %16 = arith.subf %14, %15 : vector<16x1xf32>
    %cst_9 = arith.constant 0.000000e+00 : f32
    %17 = vector.broadcast %cst_9 : f32 to vector<16x1xf32>
    %18 = arith.maximumf %16, %17 : vector<16x1xf32>
    %cst_10 = arith.constant 9.99999974E-6 : f32
    %19 = vector.broadcast %cst_10 : f32 to vector<16x1xf32>
    %20 = arith.addf %18, %19 : vector<16x1xf32>
    %21 = math.rsqrt %20 : vector<16x1xf32>
    %cst_11 = arith.constant 0.000000e+00 : f32
    %22 = vector.broadcast %cst_11 : f32 to vector<16x1xf32>
    %23 = arith.subf %22, %9 : vector<16x1xf32>
    %24 = arith.mulf %23, %21 : vector<16x1xf32>
    %25 = vector.broadcast %21 : vector<16x1xf32> to vector<16x128xf32>
    %26 = arith.mulf %5, %25 : vector<16x128xf32>
    %27 = vector.broadcast %24 : vector<16x1xf32> to vector<16x128xf32>
    %28 = arith.addf %26, %27 : vector<16x128xf32>
    %c1 = arith.constant 1 : index
    %c0_12 = arith.constant 0 : index
    %29 = vector.load %arg3[%c1, %c0_12] : memref<3x128xf32, #tpu.memory_space<vmem>>, vector<1x128xf32>
    %30 = arith.truncf %29 : vector<1x128xf32> to vector<1x128xbf16>
    %c2 = arith.constant 2 : index
    %c0_13 = arith.constant 0 : index
    %31 = vector.load %arg3[%c2, %c0_13] : memref<3x128xf32, #tpu.memory_space<vmem>>, vector<1x128xf32>
    %32 = arith.truncf %31 : vector<1x128xf32> to vector<1x128xbf16>
    %33 = arith.truncf %28 : vector<16x128xf32> to vector<16x128xbf16>
    %34 = vector.broadcast %30 : vector<1x128xbf16> to vector<16x128xbf16>
    %35 = arith.mulf %33, %34 : vector<16x128xbf16>
    %36 = vector.broadcast %32 : vector<1x128xbf16> to vector<16x128xbf16>
    %37 = arith.addf %35, %36 : vector<16x128xbf16>
    %c0_14 = arith.constant 0 : index
    %c0_15 = arith.constant 0 : index
    %38 = vector.load %arg4[%c0_14, %c0_15] : memref<16x128xbf16, #tpu.memory_space<vmem>>, vector<16x128xbf16>
    tpu.vector_store %arg4[%c0_14, %c0_15], %37 {strides = array<i32>} : memref<16x128xbf16, #tpu.memory_space<vmem>>, vector<16x128xbf16>,
    return
  }
  func.func @transform_0(%arg0: i32) -> (i32, i32) {
    %c0_i32 = arith.constant 0 : i32
    %c0_i32_0 = arith.constant 0 : i32
    return %arg0, %c0_i32 : i32, i32
  }
  func.func @transform_1(%arg0: i32) -> (i32, i32) {
    %c0_i32 = arith.constant 0 : i32
    %c0_i32_0 = arith.constant 0 : i32
    %c0_i32_1 = arith.constant 0 : i32
    return %c0_i32, %c0_i32_0 : i32, i32
  }
  func.func @transform_2(%arg0: i32) -> (i32, i32) {
    %c0_i32 = arith.constant 0 : i32
    %c0_i32_0 = arith.constant 0 : i32
    %c0_i32_1 = arith.constant 0 : i32
    return %c0_i32, %c0_i32_0 : i32, i32
  }
  func.func @transform_3(%arg0: i32) -> (i32, i32) {
    %c0_i32 = arith.constant 0 : i32
    %c0_i32_0 = arith.constant 0 : i32
    return %arg0, %c0_i32 : i32, i32
  }
}

</mosaic_0001>

<bundles_post_ra>
// kernel: tpu_custom_call.1
= control target key start
LH: loop header
LB: loop body
LE: loop exit
PB: predicated region body
PF: predicated region fallthrough
CT: control target
= control target key end

     0   :  { %8 = vsyncpa [#allocation3], 0  ;;  %s533_s0 = inlined_call_operand.hbm [shape: bf16[16,256], index: 0, kind: input, shape index: {}]   ;;  %s534_s1 = inlined_call_operand.hbm [shape: bf16[256,128], index: 1, kind: input, shape index: {}]   ;;  %s535_s2 = inlined_call_operand.vmem [shape: f32[3,128], index: 2, kind: input, shape index: {}]   ;;  %s536_s3 = inlined_call_operand.hbm [shape: bf16[16,128], index: 3, kind: output, shape index: {}]  }
   0x1   :  { %9 = vsyncpa [#allocation6], 0 }
   0x2   :  { %10 = vsyncpa [#allocation4], 0  ;;  %s455_s12 = smov [#allocation2]   ;;  %s383_s16 = scalar_lea.hbm %s533_s0, 256 }
   0x3   :  { %s16_s13 = sshll.u32 %s455_s12, 4  ;;  %p384_p0 = scmp.ne.s32.totalorder %s533_s0, %s383_s16  ;;  %s17_s13 = int_to_ptr.vmem [resolvable:$true] %s16_s13 }
   0x4   :  { %p387_p1 = scmp.lt.u32.totalorder %s383_s16, %s533_s0 }
   0x6   :  { %p389_p2 = pnand %p387_p1, %p384_p0 }
   0x8   :  { %392 = shalt.err (!%p389_p2)
}
   0x9   :  { %s393_s21 = scalar_lea.vmem %s17_s13, 256  ;;  %p398_p4 = scmp.lt.s32.totalorder %s17_s13, %s17_s13 }
   0xa   :  { %p394_p3 = scmp.ne.s32.totalorder %s17_s13, %s393_s21  ;;  %p399_p5 = scmp.lt.s32.totalorder %s393_s21, %s393_s21 }
   0xc   :  { %p400_p6 = por %p399_p5, %p398_p4 }
   0xe   :  { %p401_p7 = pnand %p400_p6, %p394_p3 }
  0x10   :  { %404 = shalt.err (!%p401_p7)
}
  0x11   :  { %s456_s22 = smov 128   ;;  %s457_s23 = smov 8  }
  0x12   :  { %22 = dma.hbm_to_vmem [thread:$0]  %s533_s0, 256, %s17_s13, [#allocation3], %s456_s22, %s456_s22, %s457_s23  }
  0x13   :  { %s458_s26 = smov [#allocation5]   ;;  %s405_s30 = scalar_lea.hbm %s534_s1, 2048 }
  0x14   :  { %s28_s27 = sshll.u32 %s458_s26, 4  ;;  %p406_p8 = scmp.ne.s32.totalorder %s534_s1, %s405_s30  ;;  %s29_s27 = int_to_ptr.vmem [resolvable:$true] %s28_s27 }
  0x15   :  { %p409_p9 = scmp.lt.u32.totalorder %s405_s30, %s534_s1 }
  0x17   :  { %p411_p10 = pnand %p409_p9, %p406_p8 }
  0x19   :  { %414 = shalt.err (!%p411_p10)
}
  0x1a   :  { %s415_s8 = scalar_lea.vmem %s29_s27, 2048  ;;  %p420_p12 = scmp.lt.s32.totalorder %s29_s27, %s29_s27 }
  0x1b   :  { %p416_p11 = scmp.ne.s32.totalorder %s29_s27, %s415_s8  ;;  %p421_p13 = scmp.lt.s32.totalorder %s415_s8, %s415_s8 }
  0x1d   :  { %p422_p0 = por %p421_p13, %p420_p12 }
  0x1f   :  { %p423_p1 = pnand %p422_p0, %p416_p11 }
  0x21   :  { %426 = shalt.err (!%p423_p1)
}
  0x22   :  { %s459_s0 = smov 64   ;;  %s460_s9 = smov 4  }
  0x23   :  { %34 = dma.hbm_to_vmem [thread:$0]  %s534_s1, 2048, %s29_s27, [#allocation6], %s459_s0, %s459_s0, %s460_s9  }
  0x24   :  { %449 = dma.done.wait [#allocation3], 256  }
  0x25   :  { %450 = vsyncadd [#allocation3], 4294967040 }
  0x26   :  { %451 = dma.done.wait [#allocation6], 2048  }
  0x27   :  { %452 = vsyncadd [#allocation6], 4294965248  ;;  %v360_v0 = vld [vmem:[#allocation5 + $0x40] sm:$0xff]   ;;  %v362_v2 = vld [vmem:[#allocation5 + $0x48] sm:$0xff]   ;;  %v270_v46 = vlaneseq }
  0x28   :  { %v361_v1 = vld [vmem:[#allocation5] sm:$0xff]   ;;  %331 = vmatprep.subr.bf16.mxu0 %v360_v0  ;;  %v363_v3 = vld [vmem:[#allocation5 + $0x8] sm:$0xff]   ;;  %v364_v4 = vld [vmem:[#allocation5 + $0x50] sm:$0xff]  }
  0x29   :  { %332 = vmatpush3.bf16.msra.mxu0 %v361_v1  ;;  %v365_v5 = vld [vmem:[#allocation5 + $0x10] sm:$0xff]   ;;  %v366_v6 = vld [vmem:[#allocation5 + $0x58] sm:$0xff]   ;;  %v368_v8 = vld [vmem:[#allocation5 + $0x60] sm:$0xff]   ;;  %v271_v49 = vshrl.u32 %v270_v46, 7 }
  0x2a   :  { %333 = vmatprep.subr.bf16.mxu0 %v362_v2  ;;  %v367_v7 = vld [vmem:[#allocation5 + $0x18] sm:$0xff]   ;;  %v369_v9 = vld [vmem:[#allocation5 + $0x20] sm:$0xff]   ;;  %v370_v10 = vld [vmem:[#allocation5 + $0x68] sm:$0xff]  }
  0x2b   :  { %v378_v11 = vld [vmem:[#allocation2 + $0x4] ss:$8 sps:$4 sm:$0xff]   ;;  %v371_v12 = vld [vmem:[#allocation5 + $0x28] sm:$0xff]   ;;  %v376_v17 = vld [vmem:[#allocation2] ss:$8 sps:$4 sm:$0xff]   ;;  %v272_v57 = vsub.s32 0, %v271_v49 }
  0x2c   :  { %221 = vmatprep.mubr.bf16.mxu0 %v378_v11  ;;  %v372_v13 = vld [vmem:[#allocation5 + $0x70] sm:$0xff]   ;;  %v374_v15 = vld [vmem:[#allocation5 + $0x78] sm:$0xff]  }
  0x2d   :  { %334 = vmatpush3.bf16.msra.mxu0 %v363_v3  ;;  %v373_v14 = vld [vmem:[#allocation5 + $0x30] sm:$0xff]   ;;  %v375_v16 = vld [vmem:[#allocation5 + $0x38] sm:$0xff]  }
  0x2e   :  { %335 = vmatprep.subr.bf16.mxu0 %v364_v4  ;;  %v310_v19 = vld [vmem:[%s535_s2] ss:$0 sm:$0xff]  ;;  %v262_v45 = vld [vmem:[%s535_s2 + $0x1] sm:$0x1]  ;;  %v264_v48 = vld [vmem:[%s535_s2 + $0x2] sm:$0x1] }
  0x2f   :  { %v263_v47 = vpack.c.bf16 %v262_v45, %v262_v45  ;;  %v265_v52 = vpack.c.bf16 %v264_v48, %v264_v48  ;;  %s461_s2 = smov [#allocation7]  }
  0x30   :  { %s297_s17 = sshll.u32 %s461_s2, 4  ;;  %s298_s17 = int_to_ptr.vmem [resolvable:$true] %s297_s17 }
  0x31   :  { %336 = vmatpush3.bf16.msra.mxu0 %v365_v5  ;;  %v268_v53 = vpack.i.b16 %v263_v47, %v263_v47  ;;  %v276_v61 = vpack.i.b16 %v265_v52, %v265_v52  ;;  %s427_s18 = scalar_lea.vmem %s298_s17, 128  ;;  %p432_p3 = scmp.lt.s32.totalorder %s298_s17, %s298_s17 }
  0x32   :  { %337 = vmatprep.subr.bf16.mxu0 %v366_v6  ;;  %p428_p2 = scmp.ne.s32.totalorder %s298_s17, %s427_s18  ;;  %p433_p4 = scmp.lt.s32.totalorder %s427_s18, %s427_s18 }
  0x33   :  { %v273_v0 = vrot.slane %v268_v53, %v272_v57  ;;  %v281_v2 = vrot.slane %v276_v61, %v272_v57 }
  0x34   :  { %p434_p5 = por %p433_p4, %p432_p3 }
  0x35   :  { %338 = vmatpush3.bf16.msra.mxu0 %v367_v7 }
  0x36   :  { %339 = vmatprep.subr.bf16.mxu0 %v368_v8  ;;  %p435_p6 = pnand %p434_p5, %p428_p2 }
  0x39   :  { %340 = vmatpush3.bf16.msra.mxu0 %v369_v9 }
  0x3a   :  { %341 = vmatprep.subr.bf16.mxu0 %v370_v10 }
  0x3d   :  { %342 = vmatpush3.bf16.msra.mxu0 %v371_v12 }
  0x3e   :  { %343 = vmatprep.subr.bf16.mxu0 %v372_v13 }
  0x41   :  { %344 = vmatpush3.bf16.msra.mxu0 %v373_v14 }
  0x42   :  { %345 = vmatprep.subr.bf16.mxu0 %v374_v15 }
  0x45   :  { %346 = vmatpush3.bf16.msra.mxu0 %v375_v16 }
  0x48   :  { %222 = vmatmul.mubr.bf16.vlgmr.msra.gmra.mrb[0].mxu0 %v376_v17 }
 0x11b   :  { %v347_v18 = vpop.f32.mrb[0].mxu0 }
 0x11c   :  { %v348_v20 = vpop.f32.mrb[1].mxu0 }
 0x11d   :  { %v349_v21 = vadd.f32 %v348_v20, %v347_v18  ;;  %v350_v22 = vpop.f32.mrb[2].mxu0 }
 0x11e   :  { %v351_v23 = vpop.f32.mrb[3].mxu0 }
 0x11f   :  { %v224_v24 = vadd.f32 %v349_v21, %v310_v19  ;;  %v352_v25 = vadd.f32 %v351_v23, %v350_v22 }
 0x121   :  { %v227_v26 = vadd.f32 %v352_v25, %v310_v19  ;;  %230 = vadd.xlane.f32.xlu0 %v224_v24  ;;  %v236_v27 = vmul.f32 %v224_v24, %v224_v24 }
 0x123   :  { %238 = vadd.xlane.f32.xlu1 %v236_v27  ;;  %v237_v28 = vmul.f32 %v227_v26, %v227_v26 }
 0x125   :  { %232 = vadd.xlane.f32.xlu0 %v227_v26 }
 0x127   :  { %240 = vadd.xlane.f32.xlu1 %v237_v28 }
 0x1ae   :  { %v231_v29 = vpop.xlane.xlu0 %230 }
 0x1af   :  { %v234_v30 = vmul.f32 0.03125, %v231_v29 }
 0x1b0   :  { %v239_v31 = vpop.xlane.xlu1 %238 }
 0x1b1   :  { %v244_v32 = vmul.f32 %v234_v30, %v234_v30  ;;  %v242_v33 = vmul.f32 0.03125, %v239_v31  ;;  %v254_v51 = vsub.f32 0.0, %v234_v30 }
 0x1b2   :  { %v233_v34 = vpop.xlane.xlu0 %232 }
 0x1b3   :  { %v246_v35 = vsub.f32 %v242_v33, %v244_v32  ;;  %v235_v36 = vmul.f32 0.03125, %v233_v34 }
 0x1b4   :  { %v241_v37 = vpop.xlane.xlu1 %240 }
 0x1b5   :  { %v248_v38 = vmax.f32 %v246_v35, 0.0  ;;  %v245_v39 = vmul.f32 %v235_v36, %v235_v36  ;;  %v243_v40 = vmul.f32 0.03125, %v241_v37  ;;  %v255_v56 = vsub.f32 0.0, %v235_v36 }
 0x1b7   :  { %v250_v41 = vadd.f32 1e-05, %v248_v38  ;;  %v247_v42 = vsub.f32 %v243_v40, %v245_v39 }
 0x1b9   :  { %379 = vrsqrt.f32 %v250_v41  ;;  %v249_v43 = vmax.f32 %v247_v42, 0.0 }
 0x1bb   :  { %v251_v44 = vadd.f32 1e-05, %v249_v43 }
 0x1bd   :  { %381 = vrsqrt.f32 %v251_v44 }
 0x1c3   :  { %v380_v50 = vpop.eup %379 }
 0x1c4   :  { %v256_v54 = vmul.f32 %v380_v50, %v254_v51  ;;  %v258_v55 = vmul.f32 %v380_v50, %v224_v24 }
 0x1c6   :  { %v260_v62 = vadd.f32 %v258_v55, %v256_v54 }
 0x1c7   :  { %v382_v58 = vpop.eup %381 }
 0x1c8   :  { %v257_v59 = vmul.f32 %v382_v58, %v255_v56  ;;  %v259_v60 = vmul.f32 %v382_v58, %v227_v26 }
 0x1ca   :  { %v261_v63 = vadd.f32 %v259_v60, %v257_v59 }
 0x1cc   :  { %v266_v1 = vpack.c.bf16 %v261_v63, %v260_v62 }
 0x1ce   :  { %v274_v3 = vmul.bf16 %v273_v0, %v266_v1 }
 0x1d0   :  { %v282_v4 = vadd.bf16 %v281_v2, %v274_v3 }
 0x1d2   :  { %v329_v5 = vcombine.low %v282_v4, %v282_v4  ;;  %v330_v6 = vcombine.high %v282_v4, %v282_v4 }
 0x1d4   :  { %290 = vst [vmem:[#allocation7] sm:$0xf] %v329_v5  ;;  %291 = vst [vmem:[#allocation7 + $0x4] sm:$0xf] %v330_v6 }
 0x1d5   :  { %438 = shalt.err (!%p435_p6)
}
 0x1d6   :  { %s439_s21 = scalar_lea.hbm %s536_s3, 128 }
 0x1d7   :  { %p440_p7 = scmp.ne.s32.totalorder %s536_s3, %s439_s21  ;;  %p443_p8 = scmp.lt.u32.totalorder %s439_s21, %s536_s3 }
 0x1d9   :  { %p445_p9 = pnand %p443_p8, %p440_p7 }
 0x1db   :  { %448 = shalt.err (!%p445_p9)
}
 0x1dc   :  { %303 = dma.vmem_to_hbm [thread:$0]  %s298_s17, 128, %s536_s3, [#allocation4], %s459_s0, %s459_s0, %s460_s9  }
 0x1dd   :  { %453 = dma.done.wait [#allocation4], 128  }
 0x1de   :  { %454 = vsyncadd [#allocation4], 4294967168 }
 0x1df   :  { %307 = vsyncpa [#allocation3], 1 }
 0x1e0   :  { %308 = vsyncpa [#allocation6], 1 }
 0x1e1   :  { %309 = vsyncpa [#allocation4], 1 }

</bundles_post_ra>
